<compile_context>
chip_gen: v7x
topology: tpu7x:2x2x1
jax: 0.10.0
libtpu: 0.0.40
codegen_flags: <defaults>
</compile_context>

<pallas_src>
import math

import jax
import jax.numpy as jnp
from jax.experimental import pallas as pl
from jax.experimental.pallas import tpu as pltpu


def _round_up(n, m=128):
    return ((n + m - 1) // m) * m


def _silu(x):
    # sigmoid(x) = 0.5 + 0.5*tanh(0.5*x): single EUP push per element.
    return x * (0.5 + 0.5 * jnp.tanh(0.5 * x))


def timestep_embedding_kernel(t_ref, aux_ref, w1_ref, w2_ref, out_ref):
    Cp = w1_ref.shape[0]
    Ep = w1_ref.shape[1]

    t = t_ref[...]                         # (B, 1) f32
    aux = aux_ref[...]                     # (6, P) f32
    freqs = aux[0:1, :Cp]
    phase = aux[1:2, :Cp]
    gamma = aux[2:3, :Cp]
    beta = aux[3:4, :Cp]
    b1 = aux[4:5, :Ep]
    b2 = aux[5:6, :Ep]

    # --- sinusoidal embedding (cos(x) = sin(x + pi/2)) ------------------------
    emb = jnp.sin(t * freqs + phase)       # (B, Cp); padded cols -> sin(0) = 0

    # --- BatchNorm1d (training-mode batch stats), folded affine ---------------
    mean = jnp.mean(emb, axis=0, keepdims=True)                     # (1, Cp)
    var = jnp.mean(emb * emb, axis=0, keepdims=True) - mean * mean  # biased
    var = jnp.maximum(var, 0.0)
    scale = gamma * jax.lax.rsqrt(var + 1e-5)                       # (1, Cp)
    shift = beta - mean * scale                                     # (1, Cp)
    x = emb * scale + shift                # 2 VPU ops per element

    # --- SiLU -> Linear(C, E) -> SiLU -> Linear(E, E) --------------------------
    x = _silu(x)
    h = jnp.dot(x.astype(jnp.bfloat16), w1_ref[...],
                preferred_element_type=jnp.float32) + b1
    h = _silu(h)
    out = jnp.dot(h.astype(jnp.bfloat16), w2_ref[...],
                  preferred_element_type=jnp.float32) + b2
    out_ref[...] = out.astype(out_ref.dtype)


def prepare_params(params, n_channels, n_embedding):
    """One-time packing/padding of parameters into kernel-ready buffers.

    Returns (aux (6, P) f32, w1 (Cp, Ep) bf16, w2 (Ep, Ep) bf16).
    Call this ONCE (outside the per-step hot path).
    """
    gamma, beta, w1, b1, w2, b2 = params
    half = n_channels // 2
    Cp = _round_up(n_channels, 128)
    Ep = _round_up(n_embedding, 128)
    P = max(Cp, Ep)

    # exponent = -log(10000) * linspace(0, 1, C//2); freqs = exp(exponent)
    exponent = -math.log(10000.0) * jnp.linspace(0.0, 1.0, half, dtype=jnp.float32)
    f = jnp.exp(exponent)                                         # (half,)
    freqs_full = (jnp.zeros((P,), jnp.float32)
                  .at[:half].set(f)
                  .at[half:n_channels].set(f))
    phase = jnp.zeros((P,), jnp.float32).at[half:n_channels].set(jnp.pi / 2)
    gamma_p = jnp.zeros((P,), jnp.float32).at[:n_channels].set(gamma)
    beta_p = jnp.zeros((P,), jnp.float32).at[:n_channels].set(beta)
    b1_p = jnp.zeros((P,), jnp.float32).at[:n_embedding].set(b1)
    b2_p = jnp.zeros((P,), jnp.float32).at[:n_embedding].set(b2)
    aux = jnp.stack([freqs_full, phase, gamma_p, beta_p, b1_p, b2_p])  # (6, P)

    w1_p = (jnp.zeros((Cp, Ep), jnp.bfloat16)
            .at[:n_channels, :n_embedding].set(w1.astype(jnp.bfloat16)))
    w2_p = (jnp.zeros((Ep, Ep), jnp.bfloat16)
            .at[:n_embedding, :n_embedding].set(w2.astype(jnp.bfloat16)))
    return aux, w1_p, w2_p


def timestep_embedding(t, prepared, n_channels, n_embedding):
    """t: (B,) float32 timesteps -> (B, n_embedding) float32.

    `prepared` comes from prepare_params (already padded/packed); the per-call
    path is just a reshape + one pallas_call (+ a lane-aligned slice if
    n_embedding is not a multiple of 128).
    """
    del n_channels  # encoded in prepared buffer shapes
    aux, w1_p, w2_p = prepared
    B = t.shape[0]
    Cp, Ep = w1_p.shape
    P = aux.shape[1]

    t2d = t.astype(jnp.float32)[:, None]                          # (B, 1)

    flops = 2 * B * (Cp * Ep + Ep * Ep)
    transcendentals = B * (2 * Cp + Ep) + Cp       # sin + 2 tanh + rsqrt
    bytes_accessed = (4 * B + 4 * 6 * P
                      + 2 * Cp * Ep + 2 * Ep * Ep + 4 * B * Ep)

    vmem_spec = pl.BlockSpec(memory_space=pltpu.MemorySpace.VMEM)
    out_padded = pl.pallas_call(
        timestep_embedding_kernel,
        out_shape=jax.ShapeDtypeStruct((B, Ep), jnp.float32),
        in_specs=[vmem_spec] * 4,
        out_specs=vmem_spec,
        cost_estimate=pl.CostEstimate(
            flops=flops,
            transcendentals=transcendentals,
            bytes_accessed=bytes_accessed),
    )(t2d, aux, w1_p, w2_p)
    if Ep == n_embedding:
        return out_padded
    return out_padded[:, :n_embedding]


def make_params(key, n_channels, n_embedding):
    """Deterministic synthetic parameters (PyTorch-like uniform init)."""
    k = jax.random.split(key, 6)
    gamma = jnp.ones((n_channels,), jnp.float32)
    beta = jnp.zeros((n_channels,), jnp.float32)
    bound1 = 1.0 / math.sqrt(n_channels)
    # stored as (in_features, out_features) so the kernel does x @ W
    w1 = jax.random.uniform(k[0], (n_channels, n_embedding), jnp.float32,
                            -bound1, bound1)
    b1 = jax.random.uniform(k[1], (n_embedding,), jnp.float32, -bound1, bound1)
    bound2 = 1.0 / math.sqrt(n_embedding)
    w2 = jax.random.uniform(k[2], (n_embedding, n_embedding), jnp.float32,
                            -bound2, bound2)
    b2 = jax.random.uniform(k[3], (n_embedding,), jnp.float32, -bound2, bound2)
    return gamma, beta, w1, b1, w2, b2


def reference(t, params, n_channels):
    """Pure-JAX f32 reference mirroring the PyTorch forward (training-mode BN)."""
    gamma, beta, w1, b1, w2, b2 = params
    half = n_channels // 2
    exponent = -math.log(10000.0) * jnp.linspace(0.0, 1.0, half, dtype=jnp.float32)
    emb = t.astype(jnp.float32)[:, None] * jnp.exp(exponent)[None, :]
    emb = jnp.concatenate([jnp.sin(emb), jnp.cos(emb)], axis=-1)
    mean = jnp.mean(emb, axis=0, keepdims=True)
    var = jnp.mean((emb - mean) ** 2, axis=0, keepdims=True)
    x = (emb - mean) / jnp.sqrt(var + 1e-5) * gamma[None, :] + beta[None, :]
    x = x * jax.nn.sigmoid(x)
    h = x @ w1 + b1[None, :]
    h = h * jax.nn.sigmoid(h)
    return h @ w2 + b2[None, :]


if __name__ == "__main__":
    n_channels = 32
    n_embedding = 64
    batch = 8

    key = jax.random.PRNGKey(0)
    k_t, k_p = jax.random.split(key)
    t = jax.random.uniform(k_t, (batch,), jnp.float32, 0.0, 1000.0)
    params = make_params(k_p, n_channels, n_embedding)

    # One-time parameter packing (hoisted out of the per-call hot path).
    prepared = jax.tree_util.tree_map(
        jax.block_until_ready, prepare_params(params, n_channels, n_embedding))

    out = jax.block_until_ready(
        timestep_embedding(t, prepared, n_channels, n_embedding))

    ref = reference(t, params, n_channels)
    assert out.shape == (batch, n_embedding)
    # Tolerance accounts for the bf16-operand / f32-accumulate MXU path.
    max_err = float(jnp.max(jnp.abs(out - ref)))
    assert jnp.allclose(out, ref, atol=5e-2, rtol=5e-2), (
        f"mismatch vs reference, max abs err={max_err}")
    print("KERNEL_OK")
</pallas_src>

<mosaic_0001>
module attributes {stable_mosaic.version = 11 : i64} {
  func.func @timestep_embedding_kernel(%arg0: memref<8x1xf32, #tpu.memory_space<vmem>>, %arg1: memref<6x128xf32, #tpu.memory_space<vmem>>, %arg2: memref<128x128xbf16, #tpu.memory_space<vmem>>, %arg3: memref<128x128xbf16, #tpu.memory_space<vmem>>, %arg4: memref<8x128xf32, #tpu.memory_space<vmem>>) attributes {dimension_semantics = [], scalar_prefetch = 0 : i64, scratch_operands = 0 : i64, tpu.core_type = #tpu.core_type<tc>} {
    %c0 = arith.constant 0 : index
    %c0_0 = arith.constant 0 : index
    %0 = vector.load %arg0[%c0, %c0_0] : memref<8x1xf32, #tpu.memory_space<vmem>>, vector<8x1xf32>
    %c0_1 = arith.constant 0 : index
    %c0_2 = arith.constant 0 : index
    %1 = vector.load %arg1[%c0_1, %c0_2] : memref<6x128xf32, #tpu.memory_space<vmem>>, vector<6x128xf32>
    %2 = vector.extract_strided_slice %1 {offsets = [0, 0], sizes = [1, 128], strides = [1, 1]} : vector<6x128xf32> to vector<1x128xf32>
    %3 = vector.extract_strided_slice %1 {offsets = [1, 0], sizes = [1, 128], strides = [1, 1]} : vector<6x128xf32> to vector<1x128xf32>
    %4 = vector.extract_strided_slice %1 {offsets = [2, 0], sizes = [1, 128], strides = [1, 1]} : vector<6x128xf32> to vector<1x128xf32>
    %5 = vector.extract_strided_slice %1 {offsets = [3, 0], sizes = [1, 128], strides = [1, 1]} : vector<6x128xf32> to vector<1x128xf32>
    %6 = vector.extract_strided_slice %1 {offsets = [4, 0], sizes = [1, 128], strides = [1, 1]} : vector<6x128xf32> to vector<1x128xf32>
    %7 = vector.extract_strided_slice %1 {offsets = [5, 0], sizes = [1, 128], strides = [1, 1]} : vector<6x128xf32> to vector<1x128xf32>
    %8 = vector.broadcast %0 : vector<8x1xf32> to vector<8x128xf32>
    %9 = vector.broadcast %2 : vector<1x128xf32> to vector<8x128xf32>
    %10 = arith.mulf %8, %9 : vector<8x128xf32>
    %11 = vector.broadcast %3 : vector<1x128xf32> to vector<8x128xf32>
    %12 = arith.addf %10, %11 : vector<8x128xf32>
    %13 = math.sin %12 : vector<8x128xf32>
    %cst = arith.constant dense<0.000000e+00> : vector<128xf32>
    %14 = vector.multi_reduction <add>, %13, %cst [0] : vector<8x128xf32> to vector<128xf32>
    %15 = vector.shape_cast %14 : vector<128xf32> to vector<1x128xf32>
    %cst_3 = arith.constant 8.000000e+00 : f32
    %16 = vector.broadcast %cst_3 : f32 to vector<1x128xf32>
    %17 = arith.divf %15, %16 : vector<1x128xf32>
    %18 = arith.mulf %13, %13 : vector<8x128xf32>
    %cst_4 = arith.constant dense<0.000000e+00> : vector<128xf32>
    %19 = vector.multi_reduction <add>, %18, %cst_4 [0] : vector<8x128xf32> to vector<128xf32>
    %20 = vector.shape_cast %19 : vector<128xf32> to vector<1x128xf32>
    %cst_5 = arith.constant 8.000000e+00 : f32
    %21 = vector.broadcast %cst_5 : f32 to vector<1x128xf32>
    %22 = arith.divf %20, %21 : vector<1x128xf32>
    %23 = arith.mulf %17, %17 : vector<1x128xf32>
    %24 = arith.subf %22, %23 : vector<1x128xf32>
    %cst_6 = arith.constant 0.000000e+00 : f32
    %25 = vector.broadcast %cst_6 : f32 to vector<1x128xf32>
    %26 = arith.maximumf %24, %25 : vector<1x128xf32>
    %cst_7 = arith.constant 9.99999974E-6 : f32
    %27 = vector.broadcast %cst_7 : f32 to vector<1x128xf32>
    %28 = arith.addf %26, %27 : vector<1x128xf32>
    %29 = math.rsqrt %28 : vector<1x128xf32>
    %30 = arith.mulf %4, %29 : vector<1x128xf32>
    %31 = arith.mulf %17, %30 : vector<1x128xf32>
    %32 = arith.subf %5, %31 : vector<1x128xf32>
    %33 = vector.broadcast %30 : vector<1x128xf32> to vector<8x128xf32>
    %34 = arith.mulf %13, %33 : vector<8x128xf32>
    %35 = vector.broadcast %32 : vector<1x128xf32> to vector<8x128xf32>
    %36 = arith.addf %34, %35 : vector<8x128xf32>
    %cst_8 = arith.constant 5.000000e-01 : f32
    %37 = vector.broadcast %cst_8 : f32 to vector<8x128xf32>
    %38 = arith.mulf %37, %36 : vector<8x128xf32>
    %39 = math.tanh %38 : vector<8x128xf32>
    %cst_9 = arith.constant 5.000000e-01 : f32
    %40 = vector.broadcast %cst_9 : f32 to vector<8x128xf32>
    %41 = arith.mulf %40, %39 : vector<8x128xf32>
    %cst_10 = arith.constant 5.000000e-01 : f32
    %42 = vector.broadcast %cst_10 : f32 to vector<8x128xf32>
    %43 = arith.addf %42, %41 : vector<8x128xf32>
    %44 = arith.mulf %36, %43 : vector<8x128xf32>
    %45 = arith.truncf %44 : vector<8x128xf32> to vector<8x128xbf16>
    %c0_11 = arith.constant 0 : index
    %c0_12 = arith.constant 0 : index
    %46 = vector.load %arg2[%c0_11, %c0_12] : memref<128x128xbf16, #tpu.memory_space<vmem>>, vector<128x128xbf16>
    %cst_13 = arith.constant dense<0.000000e+00> : vector<8x128xf32>
    %47 = tpu.matmul %45, %46, %cst_13 {dimension_numbers = #tpu.dot_dimension_numbers<[1], [0], [0], [1], [0, 0, 1, 1], [], []>} : vector<8x128xbf16>, vector<128x128xbf16>, vector<8x128xf32> -> vector<8x128xf32>
    %48 = vector.broadcast %6 : vector<1x128xf32> to vector<8x128xf32>
    %49 = arith.addf %47, %48 : vector<8x128xf32>
    %cst_14 = arith.constant 5.000000e-01 : f32
    %50 = vector.broadcast %cst_14 : f32 to vector<8x128xf32>
    %51 = arith.mulf %50, %49 : vector<8x128xf32>
    %52 = math.tanh %51 : vector<8x128xf32>
    %cst_15 = arith.constant 5.000000e-01 : f32
    %53 = vector.broadcast %cst_15 : f32 to vector<8x128xf32>
    %54 = arith.mulf %53, %52 : vector<8x128xf32>
    %cst_16 = arith.constant 5.000000e-01 : f32
    %55 = vector.broadcast %cst_16 : f32 to vector<8x128xf32>
    %56 = arith.addf %55, %54 : vector<8x128xf32>
    %57 = arith.mulf %49, %56 : vector<8x128xf32>
    %58 = arith.truncf %57 : vector<8x128xf32> to vector<8x128xbf16>
    %c0_17 = arith.constant 0 : index
    %c0_18 = arith.constant 0 : index
    %59 = vector.load %arg3[%c0_17, %c0_18] : memref<128x128xbf16, #tpu.memory_space<vmem>>, vector<128x128xbf16>
    %cst_19 = arith.constant dense<0.000000e+00> : vector<8x128xf32>
    %60 = tpu.matmul %58, %59, %cst_19 {dimension_numbers = #tpu.dot_dimension_numbers<[1], [0], [0], [1], [0, 0, 1, 1], [], []>} : vector<8x128xbf16>, vector<128x128xbf16>, vector<8x128xf32> -> vector<8x128xf32>
    %61 = vector.broadcast %7 : vector<1x128xf32> to vector<8x128xf32>
    %62 = arith.addf %60, %61 : vector<8x128xf32>
    %c0_20 = arith.constant 0 : index
    %c0_21 = arith.constant 0 : index
    %63 = vector.load %arg4[%c0_20, %c0_21] : memref<8x128xf32, #tpu.memory_space<vmem>>, vector<8x128xf32>
    tpu.vector_store %arg4[%c0_20, %c0_21], %62 {strides = array<i32>} : memref<8x128xf32, #tpu.memory_space<vmem>>, vector<8x128xf32>,
    return
  }
}

</mosaic_0001>

<bundles_post_ra>
// kernel: tpu_custom_call.1
= control target key start
LH: loop header
LB: loop body
LE: loop exit
PB: predicated region body
PF: predicated region fallthrough
CT: control target
= control target key end

     0   :  { %9 = vsyncpa [#allocation3], 0  ;;  %s781_s0 = inlined_call_operand.vmem [shape: f32[8,1], index: 0, kind: input, shape index: {}]   ;;  %s782_s1 = inlined_call_operand.vmem [shape: f32[6,128], index: 1, kind: input, shape index: {}]   ;;  %s783_s2 = inlined_call_operand.hbm [shape: bf16[128,128], index: 2, kind: input, shape index: {}]   ;;  %s784_s3 = inlined_call_operand.hbm [shape: bf16[128,128], index: 3, kind: input, shape index: {}]   ;;  %s785_s4 = inlined_call_operand.hbm [shape: f32[8,128], index: 4, kind: output, shape index: {}]  }
   0x1   :  { %10 = vsyncpa [#allocation6], 0 }
   0x2   :  { %11 = vsyncpa [#allocation4], 0  ;;  %s645_s15 = smov [#allocation2]   ;;  %s573_s19 = scalar_lea.hbm %s783_s2, 1024 }
   0x3   :  { %s21_s16 = sshll.u32 %s645_s15, 4  ;;  %p574_p0 = scmp.ne.s32.totalorder %s783_s2, %s573_s19  ;;  %s22_s16 = int_to_ptr.vmem [resolvable:$true] %s21_s16 }
   0x4   :  { %p577_p1 = scmp.lt.u32.totalorder %s573_s19, %s783_s2 }
   0x6   :  { %p579_p2 = pnand %p577_p1, %p574_p0 }
   0x8   :  { %582 = shalt.err (!%p579_p2)
}
   0x9   :  { %s583_s24 = scalar_lea.vmem %s22_s16, 1024  ;;  %p588_p4 = scmp.lt.s32.totalorder %s22_s16, %s22_s16 }
   0xa   :  { %p584_p3 = scmp.ne.s32.totalorder %s22_s16, %s583_s24  ;;  %p589_p5 = scmp.lt.s32.totalorder %s583_s24, %s583_s24 }
   0xc   :  { %p590_p6 = por %p589_p5, %p588_p4 }
   0xe   :  { %p591_p7 = pnand %p590_p6, %p584_p3 }
  0x10   :  { %594 = shalt.err (!%p591_p7)
}
  0x11   :  { %s646_s25 = smov 64   ;;  %s647_s26 = smov 4  }
  0x12   :  { %27 = dma.hbm_to_vmem [thread:$0]  %s783_s2, 1024, %s22_s16, [#allocation3], %s646_s25, %s646_s25, %s647_s26  }
  0x13   :  { %s648_s29 = smov [#allocation5]   ;;  %s595_s7 = scalar_lea.hbm %s784_s3, 1024 }
  0x14   :  { %s33_s30 = sshll.u32 %s648_s29, 4  ;;  %p596_p8 = scmp.ne.s32.totalorder %s784_s3, %s595_s7  ;;  %s34_s30 = int_to_ptr.vmem [resolvable:$true] %s33_s30 }
  0x15   :  { %p599_p9 = scmp.lt.u32.totalorder %s595_s7, %s784_s3 }
  0x17   :  { %p601_p10 = pnand %p599_p9, %p596_p8 }
  0x19   :  { %604 = shalt.err (!%p601_p10)
}
  0x1a   :  { %s605_s12 = scalar_lea.vmem %s34_s30, 1024  ;;  %p610_p12 = scmp.lt.s32.totalorder %s34_s30, %s34_s30 }
  0x1b   :  { %p606_p11 = scmp.ne.s32.totalorder %s34_s30, %s605_s12  ;;  %p611_p13 = scmp.lt.s32.totalorder %s605_s12, %s605_s12 }
  0x1d   :  { %p612_p0 = por %p611_p13, %p610_p12 }
  0x1f   :  { %p613_p1 = pnand %p612_p0, %p606_p11 }
  0x21   :  { %616 = shalt.err (!%p613_p1)
}
  0x22   :  { %39 = dma.hbm_to_vmem [thread:$0]  %s784_s3, 1024, %s34_s30, [#allocation6], %s646_s25, %s646_s25, %s647_s26  }
  0x23   :  { %639 = dma.done.wait [#allocation3], 1024  }
  0x24   :  { %640 = vsyncadd [#allocation3], 4294966272 }
  0x25   :  { %641 = dma.done.wait [#allocation6], 1024  }
  0x26   :  { %642 = vsyncadd [#allocation6], 4294966272  ;;  %v649_v0 = vmov 0   ;;  %v47_v1 = vld [vmem:[%s781_s0] sm:$0xff]  ;;  %v547_v2 = vld [vmem:[#allocation2] sm:$0xff]   ;;  %v650_v3 = vmov 0.0   ;;  %v54_v11 = vlaneseq }
  0x27   :  { %546 = vset.pattern.permute.xlu0 %v649_v0  ;;  %488 = vmatprep.subr.bf16.mxu0 %v650_v3  ;;  %vm651_vm0 = vmmov 0   ;;  %v548_v4 = vld [vmem:[#allocation2 + $0x8] sm:$0xff]   ;;  %v549_v5 = vld [vmem:[#allocation2 + $0x10] sm:$0xff]   ;;  %v550_v6 = vld [vmem:[#allocation2 + $0x18] sm:$0xff]   ;;  %v652_v31 = vmov 683565275  }
  0x28   :  { %51 = vperm.xlu0 %546, %v47_v1   ;;  %504 = vmatprep.mubr.msk.bf16.mxu0 %vm651_vm0, %v650_v3  ;;  %v551_v7 = vld [vmem:[#allocation2 + $0x20] sm:$0xff]   ;;  %v552_v8 = vld [vmem:[#allocation2 + $0x28] sm:$0xff]   ;;  %v553_v9 = vld [vmem:[#allocation2 + $0x30] sm:$0xff]   ;;  %v722_v12 = vshrl.u32 %v54_v11, 7  ;;  %v653_v33 = vmov 2475754826  }
  0x29   :  { %489 = vmatpush3.bf16.msra.mxu0 %v547_v2  ;;  %508 = vmatprep.subr.bf16.mxu1 %v650_v3  ;;  %v554_v10 = vld [vmem:[#allocation2 + $0x38] sm:$0xff]   ;;  %v728_v14 = vld [vmem:[%s782_s1] sm:$0x3f]  ;;  %v654_v36 = vmov 2131351028   ;;  %v555_v62 = vld [vmem:[#allocation5] sm:$0xff]  }
  0x2a   :  { %490 = vmatprep.subr.bf16.mxu0 %v650_v3  ;;  %524 = vmatprep.mubr.msk.bf16.mxu1 %vm651_vm0, %v650_v3  ;;  %v56_v13 = vsub.s32 0, %v722_v12  ;;  %v61_v15 = vsub.s32 1, %v722_v12  ;;  %v655_v39 = vmov 2102212464   ;;  %v656_v42 = vmov 920167782  }
  0x2b   :  { %v657_v45 = vmov 1326507024   ;;  %509 = vmatpush3.bf16.msra.mxu1 %v555_v62  ;;  %s658_s1 = smov [#allocation7]  }
  0x2c   :  { %v57_v16 = vrot.slane %v728_v14, %v56_v13  ;;  %v62_v17 = vrot.slane %v728_v14, %v61_v15  ;;  %510 = vmatprep.subr.bf16.mxu1 %v650_v3  ;;  %s440_s16 = sshll.u32 %s658_s1, 4  ;;  %s441_s16 = int_to_ptr.vmem [resolvable:$true] %s440_s16 }
  0x2d   :  { %491 = vmatpush3.bf16.msra.mxu0 %v548_v4  ;;  %s617_s17 = scalar_lea.vmem %s441_s16, 128  ;;  %p622_p3 = scmp.lt.s32.totalorder %s441_s16, %s441_s16 }
  0x2e   :  { %492 = vmatprep.subr.bf16.mxu0 %v650_v3  ;;  %p618_p2 = scmp.ne.s32.totalorder %s441_s16, %s617_s17  ;;  %p623_p4 = scmp.lt.s32.totalorder %s617_s17, %s617_s17 }
  0x30   :  { %p624_p5 = por %p623_p4, %p622_p3 }
  0x31   :  { %493 = vmatpush3.bf16.msra.mxu0 %v549_v5 }
  0x32   :  { %494 = vmatprep.subr.bf16.mxu0 %v650_v3  ;;  %p625_p6 = pnand %p624_p5, %p618_p2 }
  0x35   :  { %495 = vmatpush3.bf16.msra.mxu0 %v550_v6 }
  0x36   :  { %496 = vmatprep.subr.bf16.mxu0 %v650_v3 }
  0x39   :  { %497 = vmatpush3.bf16.msra.mxu0 %v551_v7 }
  0x3a   :  { %498 = vmatprep.subr.bf16.mxu0 %v650_v3 }
  0x3d   :  { %499 = vmatpush3.bf16.msra.mxu0 %v552_v8  ;;  %v556_v8 = vld [vmem:[#allocation5 + $0x8] sm:$0xff]  }
  0x3e   :  { %500 = vmatprep.subr.bf16.mxu0 %v650_v3  ;;  %511 = vmatpush3.bf16.msra.mxu1 %v556_v8 }
  0x3f   :  { %512 = vmatprep.subr.bf16.mxu1 %v650_v3 }
  0x41   :  { %501 = vmatpush3.bf16.msra.mxu0 %v553_v9 }
  0x42   :  { %502 = vmatprep.subr.bf16.mxu0 %v650_v3 }
  0x45   :  { %503 = vmatpush3.bf16.msra.mxu0 %v554_v10 }
  0xa7   :  { %v52_v18 = vpop.permute.xlu0 %51 }
  0xa8   :  { %v58_v19 = vmul.f32 %v57_v16, %v52_v18 }
  0xaa   :  { %v733_v20 = vadd.f32 %v62_v17, %v58_v19 }
  0xac   :  { %v67_v21 = vand.u32 2139095040, %v733_v20  ;;  %v64_v25 = vand.u32 2147483647, %v733_v20  ;;  %vm66_vm8 = vcmp.lt.s32.totalorder %v733_v20, 0  ;;  %vm156_vm13 = vweird.f32 %v733_v20 }
  0xae   :  { %v68_v22 = vshrl.u32 %v67_v21, 23  ;;  %v71_v28 = vand.u32 8388607, %v64_v25  ;;  %vm65_vm9 = vcmp.le.f32.partialorder %v64_v25, 0.7853982 }
  0xb0   :  { %v450_v23 = vadd.s32 4294967169, %v68_v22  ;;  %v72_v47 = vor.u32 8388608, %v71_v28 }
  0xb2   :  { %v74_v24 = vadd.s32 1, %v450_v23  ;;  %v112_v61 = vshll.u32 %v72_v47, 8 }
  0xb4   :  { %vm75_vm1 = vcmp.gt.s32.totalorder %v74_v24, 0 }
  0xb5   :  { %v76_v26 = vsel %vm75_vm1, %v74_v24, 0 }
  0xb6   :  { %v78_v27 = vand.u32 31, %v76_v26  ;;  %v77_v30 = vshrl.u32 %v76_v26, 5 }
  0xb8   :  { %v79_v29 = vsub.s32 32, %v78_v27  ;;  %v81_v32 = vshll.u32 %v652_v31, %v78_v27  ;;  %v84_v34 = vshll.u32 %v653_v33, %v78_v27  ;;  %v87_v38 = vshll.u32 %v654_v36, %v78_v27 }
  0xb9   :  { %v90_v41 = vshll.u32 %v655_v39, %v78_v27  ;;  %v93_v44 = vshll.u32 %v656_v42, %v78_v27  ;;  %vm96_vm2 = vcmp.lt.s32.totalorder %v77_v30, 1  ;;  %vm99_vm3 = vcmp.lt.s32.totalorder %v77_v30, 4 }
  0xba   :  { %v82_v35 = vshrl.u32 %v653_v33, %v79_v29  ;;  %v85_v37 = vshrl.u32 %v654_v36, %v79_v29  ;;  %v88_v40 = vshrl.u32 %v655_v39, %v79_v29  ;;  %v91_v43 = vshrl.u32 %v656_v42, %v79_v29 }
  0xbb   :  { %v94_v46 = vshrl.u32 %v657_v45, %v79_v29  ;;  %v80_v56 = vshrl.u32 %v652_v31, %v79_v29  ;;  %vm98_vm4 = vcmp.lt.s32.totalorder %v77_v30, 3  ;;  %vm97_vm5 = vcmp.lt.s32.totalorder %v77_v30, 2 }
  0xbc   :  { %v83_v48 = vor.u32 %v82_v35, %v81_v32  ;;  %v86_v49 = vor.u32 %v85_v37, %v84_v34  ;;  %v89_v50 = vor.u32 %v88_v40, %v87_v38  ;;  %v92_v51 = vor.u32 %v91_v43, %v90_v41 }
  0xbd   :  { %v95_v52 = vor.u32 %v94_v46, %v93_v44 }
  0xbe   :  { %v101_v53 = vsel %vm99_vm3, %v89_v50, 2102212464  ;;  %v104_v54 = vsel %vm96_vm2, %v83_v48, %v86_v49  ;;  %v108_v55 = vsel %vm96_vm2, %v86_v49, %v89_v50  ;;  %v105_v57 = vsel %vm99_vm3, %v92_v51, 920167782 }
  0xbf   :  { %v109_v58 = vsel %vm99_vm3, %v95_v52, 1326507024  ;;  %v106_v59 = vsel %vm98_vm4, %v89_v50, %v105_v57  ;;  %v100_v63 = vsel %vm96_vm2, %v80_v56, %v83_v48  ;;  %v102_v0 = vsel %vm98_vm4, %v86_v49, %v101_v53 }
  0xc0   :  { %v110_v60 = vsel %vm98_vm4, %v92_v51, %v109_v58  ;;  %v107_v1 = vsel %vm97_vm5, %v104_v54, %v106_v59  ;;  %v103_v9 = vsel %vm97_vm5, %v100_v63, %v102_v0 }
  0xc1   :  { %v111_v2 = vsel %vm97_vm5, %v108_v55, %v110_v60  ;;  %v742_v6 = vmul.u32.u64.low %v112_v61, %v107_v1  ;;  %v743_v7 = vmul.u32.u64.high %v112_v61, %v107_v1, %v742_v6  ;;  %v119_v11 = vmul.u32 %v112_v61, %v103_v9 }
  0xc2   :  { %v739_v4 = vmul.u32.u64.low %v112_v61, %v111_v2  ;;  %v740_v5 = vmul.u32.u64.high %v112_v61, %v111_v2, %v739_v4 }
  0xc3   :  { %v122_v10 = vadd.s32 1, %v743_v7 }
  0xc4   :  { %vm121_vm6 = vc.u32 %v740_v5, %v742_v6  ;;  %v120_v27 = vadd.s32 %v742_v6, %v740_v5 }
  0xc5   :  { %v123_v13 = vsel %vm121_vm6, %v122_v10, %v743_v7 }
  0xc6   :  { %v124_v15 = vadd.s32 %v123_v13, %v119_v11  ;;  %v197_v11 = vsub.s32 2, %v722_v12 }
  0xc8   :  { %v125_v16 = vadd.s32 536870912, %v124_v15 }
  0xca   :  { %v126_v17 = vshrl.u32 %v125_v16, 30 }
  0xcc   :  { %v127_v18 = vshll.u32 %v126_v17, 30  ;;  %v150_v39 = vsub.s32 4, %v126_v17 }
  0xce   :  { %v128_v19 = vsub.s32 %v124_v15, %v127_v18  ;;  %v151_v42 = vsel %vm66_vm8, %v150_v39, %v126_v17  ;;  %v202_v17 = vsub.s32 3, %v722_v12 }
  0xcf   :  { %v153_v44 = vsel %vm65_vm9, 0, %v151_v42 }
  0xd0   :  { %v130_v21 = vsub.s32 0, %v128_v19  ;;  %v157_v45 = vadd.s32 3, %v153_v44 }
  0xd2   :  { %v451_v22 = vmin.u32 %v130_v21, %v128_v19  ;;  %v158_v46 = vand.u32 3, %v157_v45 }
  0xd4   :  { %v132_v23 = vclz %v451_v22  ;;  %vm163_vm10 = vcmp.eq.s32.totalorder %v158_v46, 2  ;;  %vm160_vm11 = vcmp.eq.s32.totalorder %v158_v46, 0  ;;  %vm159_vm12 = vcmp.lt.s32.totalorder %v158_v46, 2 }
  0xd6   :  { %v452_v24 = vadd.s32 4294967294, %v132_v23 }
  0xd8   :  { %vm453_vm7 = vcmp.lt.s32.totalorder %v452_v24, 0 }
  0xd9   :  { %v135_v26 = vsel %vm453_vm7, 0, %v452_v24 }
  0xda   :  { %v136_v28 = vsub.s32 32, %v135_v26  ;;  %v140_v29 = vsub.s32 4294967266, %v135_v26  ;;  %v137_v30 = vshll.u32 %v128_v19, %v135_v26 }
  0xdc   :  { %v138_v31 = vshrl.u32 %v120_v27, %v136_v28  ;;  %v141_v32 = vadd.s32 127, %v140_v29 }
  0xde   :  { %v139_v33 = vor.u32 %v138_v31, %v137_v30  ;;  %v142_v34 = vshll.u32 %v141_v32, 23  ;;  %v557_v30 = vld [vmem:[#allocation5 + $0x10] sm:$0xff]   ;;  %v558_v31 = vld [vmem:[#allocation5 + $0x18] sm:$0xff]   ;;  %v559_v32 = vld [vmem:[#allocation5 + $0x20] sm:$0xff]  }
  0xdf   :  { %513 = vmatpush3.bf16.msra.mxu1 %v557_v30 }
  0xe0   :  { %v143_v35 = vor.u32 4788187, %v142_v34  ;;  %v146_v37 = vcvt.s32.f32 %v139_v33  ;;  %514 = vmatprep.subr.bf16.mxu1 %v650_v3  ;;  %v560_v33 = vld [vmem:[#allocation5 + $0x28] sm:$0xff]   ;;  %v561_v34 = vld [vmem:[#allocation5 + $0x30] sm:$0xff]  }
  0xe2   :  { %v144_v36 = vand.u32 2147483647, %v143_v35  ;;  %v562_v35 = vld [vmem:[#allocation5 + $0x38] sm:$0xff]  }
  0xe3   :  { %515 = vmatpush3.bf16.msra.mxu1 %v558_v31 }
  0xe4   :  { %v147_v38 = vmul.f32 %v146_v37, %v144_v36  ;;  %516 = vmatprep.subr.bf16.mxu1 %v650_v3  ;;  %v229_v36 = vsub.s32 4, %v722_v12 }
  0xe6   :  { %v148_v40 = vxor.u32 2147483648, %v147_v38  ;;  %v230_v37 = vrot.slane %v728_v14, %v229_v36 }
  0xe7   :  { %517 = vmatpush3.bf16.msra.mxu1 %v559_v32 }
  0xe8   :  { %v149_v41 = vsel %vm66_vm8, %v148_v40, %v147_v38  ;;  %518 = vmatprep.subr.bf16.mxu1 %v650_v3 }
  0xe9   :  { %v152_v43 = vsel %vm65_vm9, %v733_v20, %v149_v41 }
  0xea   :  { %563 = vcosq.f32 %v152_v43 }
  0xeb   :  { %565 = vsinq.f32 %v152_v43  ;;  %519 = vmatpush3.bf16.msra.mxu1 %v560_v33 }
  0xec   :  { %520 = vmatprep.subr.bf16.mxu1 %v650_v3 }
  0xef   :  { %521 = vmatpush3.bf16.msra.mxu1 %v561_v34 }
  0xf0   :  { %522 = vmatprep.subr.bf16.mxu1 %v650_v3  ;;  %v343_v3 = vsub.s32 5, %v722_v12 }
  0xf3   :  { %523 = vmatpush3.bf16.msra.mxu1 %v562_v35 }
  0xf4   :  { %v564_v47 = vpop.eup %563 }
  0xf5   :  { %v566_v48 = vpop.eup %565  ;;  %v164_v49 = vxor.u32 2147483648, %v564_v47 }
  0xf6   :  { %v161_v50 = vxor.u32 2147483648, %v566_v48 }
  0xf7   :  { %v165_v51 = vsel %vm163_vm10, %v164_v49, %v566_v48  ;;  %v344_v49 = vrot.slane %v728_v14, %v343_v3 }
  0xf8   :  { %v162_v52 = vsel %vm160_vm11, %v564_v47, %v161_v50 }
  0xf9   :  { %v166_v25 = vsel %vm159_vm12, %v162_v52, %v165_v51 }
  0xfa   :  { %v167_v53 = vsel %vm156_vm13, nan, %v166_v25 }
  0xfb   :  { %v168_v54 = vrot.slane %v167_v53, 4  ;;  %v176_v55 = vmul.f32 %v167_v53, %v167_v53 }
  0xfd   :  { %v169_v56 = vadd.f32 %v168_v54, %v167_v53  ;;  %v177_v57 = vrot.slane %v176_v55, 4 }
  0xff   :  { %v170_v58 = vrot.slane %v169_v56, 2  ;;  %v178_v59 = vadd.f32 %v177_v57, %v176_v55 }
 0x101   :  { %v171_v60 = vadd.f32 %v170_v58, %v169_v56  ;;  %v179_v61 = vrot.slane %v178_v59, 2 }
 0x103   :  { %v172_v62 = vrot.slane %v171_v60, 1  ;;  %v180_v63 = vadd.f32 %v179_v61, %v178_v59 }
 0x105   :  { %v173_v0 = vadd.f32 %v172_v62, %v171_v60  ;;  %v181_v1 = vrot.slane %v180_v63, 1 }
 0x107   :  { %v175_v2 = vmul.f32 0.125, %v173_v0  ;;  %v182_v4 = vadd.f32 %v181_v1, %v180_v63 }
 0x109   :  { %v183_v5 = vmul.f32 0.125, %v182_v4  ;;  %v184_v6 = vmul.f32 %v175_v2, %v175_v2 }
 0x10b   :  { %v185_v7 = vsub.f32 %v183_v5, %v184_v6 }
 0x10d   :  { %v186_v20 = vmax.f32 %v185_v7, 0.0 }
 0x10f   :  { %v187_v8 = vadd.f32 1e-05, %v186_v20 }
 0x111   :  { %567 = vrsqrt.f32 %v187_v8 }
 0x11b   :  { %v568_v9 = vpop.eup %567 }
 0x11c   :  { %v189_v10 = vmul.f32 %v568_v9, %v728_v14 }
 0x11e   :  { %v190_v13 = vmul.f32 %v189_v10, %v175_v2  ;;  %v198_v16 = vrot.slane %v189_v10, %v197_v11 }
 0x120   :  { %v192_v15 = vrot.slane %v190_v13, 7  ;;  %v199_v19 = vmul.f32 %v198_v16, %v167_v53 }
 0x122   :  { %v194_v18 = vsub.f32 %v728_v14, %v192_v15 }
 0x124   :  { %v203_v21 = vrot.slane %v194_v18, %v202_v17 }
 0x126   :  { %v204_v22 = vadd.f32 %v203_v21, %v199_v19 }
 0x128   :  { %v205_v23 = vmul.f32 0.5, %v204_v22 }
 0x12a   :  { %569 = vtanh.f32 %v205_v23 }
 0x134   :  { %v570_v24 = vpop.eup %569 }
 0x135   :  { %v207_v26 = vmul.f32 0.5, %v570_v24 }
 0x137   :  { %v208_v27 = vadd.f32 0.5, %v207_v26 }
 0x139   :  { %v209_v28 = vmul.f32 %v208_v27, %v204_v22 }
 0x13b   :  { %v210_v29 = vpack.c.bf16 %v209_v28, %v209_v28 }
 0x13d   :  { %505 = vmatmul.mubr.bf16.vlgmr.msra.gmra.mrb[0].mxu0 %v210_v29 }
 0x210   :  { %v313_v38 = vpop.f32.mrb[0].mxu0 }
 0x211   :  { %v314_v39 = vadd.f32 %v313_v38, %v230_v37  ;;  %v506_v40 = vpop.f32.mrb[1].mxu0 }
 0x212   :  { %v316_v41 = vpop.f32.mrb[2].mxu0 }
 0x213   :  { %v319_v42 = vmul.f32 0.5, %v314_v39  ;;  %v507_v43 = vpop.f32.mrb[3].mxu0 }
 0x215   :  { %571 = vtanh.f32 %v319_v42 }
 0x21f   :  { %v572_v44 = vpop.eup %571 }
 0x220   :  { %v321_v45 = vmul.f32 0.5, %v572_v44 }
 0x222   :  { %v322_v46 = vadd.f32 0.5, %v321_v45 }
 0x224   :  { %v323_v47 = vmul.f32 %v322_v46, %v314_v39 }
 0x226   :  { %v324_v48 = vpack.c.bf16 %v323_v47, %v323_v47 }
 0x228   :  { %525 = vmatmul.mubr.bf16.vlgmr.msra.gmra.mrb[0].mxu1 %v324_v48 }
 0x2fb   :  { %v427_v50 = vpop.f32.mrb[0].mxu1 }
 0x2fc   :  { %v428_v51 = vadd.f32 %v427_v50, %v344_v49  ;;  %v526_v52 = vpop.f32.mrb[1].mxu1 }
 0x2fd   :  { %v430_v25 = vpop.f32.mrb[2].mxu1 }
 0x2fe   :  { %433 = vst [vmem:[#allocation7] sm:$0xff] %v428_v51  ;;  %v527_v53 = vpop.f32.mrb[3].mxu1 }
 0x2ff   :  { %628 = shalt.err (!%p625_p6)
}
 0x300   :  { %s629_s20 = scalar_lea.hbm %s785_s4, 128 }
 0x301   :  { %p630_p7 = scmp.ne.s32.totalorder %s785_s4, %s629_s20  ;;  %p633_p8 = scmp.lt.u32.totalorder %s629_s20, %s785_s4 }
 0x303   :  { %p635_p9 = pnand %p633_p8, %p630_p7 }
 0x305   :  { %638 = shalt.err (!%p635_p9)
}
 0x306   :  { %443 = dma.vmem_to_hbm [thread:$0]  %s441_s16, 128, %s785_s4, [#allocation4]  }
 0x307   :  { %643 = dma.done.wait [#allocation4], 128  }
 0x308   :  { %644 = vsyncadd [#allocation4], 4294967168 }
 0x309   :  { %447 = vsyncpa [#allocation3], 1 }
 0x30a   :  { %448 = vsyncpa [#allocation6], 1 }
 0x30b   :  { %449 = vsyncpa [#allocation4], 1 }

</bundles_post_ra>
